<compile_context>
chip_gen: v7x
topology: tpu7x:2x2x1
jax: 0.10.0
libtpu: 0.0.40
codegen_flags: <defaults>
</compile_context>

<pallas_src>
import jax
import jax.numpy as jnp
from jax.experimental import pallas as pl
from jax.experimental.pallas import tpu as pltpu


def _round_up(a, m):
    return -(-a // m) * m


def _pick_tile_n(n, max_rows, split_threshold=1024):
    """Rows per grid step for the fast (full-D) path.

    Never enlarges the data streamed: either an 8-multiple tile with ragged last
    block, or a single full-N block.  Splits into >= 2 tiles only for large N
    (pipelining + v7x megacore) so small problems pay no extra per-step overhead.
    """
    if max_rows >= n:
        if n >= split_threshold:
            half = _round_up(pl.cdiv(n, 2), 8)
            if half < n:
                return half
        return n  # single block equal to the full N dim (always a legal block)
    return max(8, (max_rows // 8) * 8)


def _gemv_kernel(x_ref, v_ref, o_ref):
    # x_ref: (tile_n, D), v_ref: (D, 1), o_ref: (tile_n, 1)
    o_ref[...] = jnp.dot(
        x_ref[...], v_ref[...], preferred_element_type=jnp.float32
    ).astype(o_ref.dtype)


def _gemv_kernel_ktiled(x_ref, v_ref, o_ref, acc_ref):
    # x_ref: (tile_n, tile_d), v_ref: (tile_d, 1), o_ref/acc_ref: (tile_n, 1)
    k = pl.program_id(1)

    @pl.when(k == 0)
    def _():
        acc_ref[...] = jnp.zeros_like(acc_ref)

    acc_ref[...] += jnp.dot(
        x_ref[...], v_ref[...], preferred_element_type=jnp.float32
    )

    @pl.when(k == pl.num_programs(1) - 1)
    def _():
        o_ref[...] = acc_ref[...].astype(o_ref.dtype)


def linear_dual_variable_forward(x, v, *, compute_dtype=None, tile_budget_bytes=4 << 20):
    """Compute v @ x.T (== x @ v) with the matmul inside a Pallas TPU kernel.

    x: (N, D), v: (D,) -> returns (N,) in x.dtype.
    compute_dtype: optionally cast the streamed operands (e.g. jnp.bfloat16) to
    halve HBM traffic; accumulation is always f32.
    """
    n, d = x.shape
    assert v.shape == (d,)
    out_dtype = x.dtype
    if compute_dtype is not None:
        x = x.astype(compute_dtype)
        v = v.astype(compute_dtype)

    itemsize = jnp.dtype(x.dtype).itemsize
    out_itemsize = jnp.dtype(out_dtype).itemsize
    v_col = v.reshape(d, 1)

    cost = pl.CostEstimate(
        flops=2 * n * d,
        transcendentals=0,
        bytes_accessed=n * d * itemsize + d * itemsize + n * out_itemsize,
    )

    def _compiler_params(dims, resident_bytes):
        # Only override the scoped-VMEM limit when the requested tiles actually
        # need more than the smallest (v5e, 16 MiB) default.
        vmem_limit = None
        if resident_bytes > (14 << 20):
            vmem_limit = int(min(resident_bytes + (2 << 20), 64 << 20))
        return pltpu.CompilerParams(
            dimension_semantics=dims, vmem_limit_bytes=vmem_limit
        )

    max_rows = (tile_budget_bytes // max(1, d * itemsize)) // 8 * 8

    if max_rows >= 8:
        # ---- Fast path: full D per block, grid over N only, no padding of x. ----
        tile_n = _pick_tile_n(n, max_rows)
        grid = (pl.cdiv(n, tile_n),)
        resident = 2 * tile_n * d * itemsize + 2 * tile_n * out_itemsize + 2 * d * itemsize

        out = pl.pallas_call(
            _gemv_kernel,
            out_shape=jax.ShapeDtypeStruct((n, 1), out_dtype),
            grid_spec=pltpu.PrefetchScalarGridSpec(
                num_scalar_prefetch=0,
                grid=grid,
                in_specs=[
                    pl.BlockSpec((tile_n, d), lambda i: (i, 0)),  # x rows, full D
                    pl.BlockSpec((d, 1), lambda i: (0, 0)),       # v column (tiny)
                ],
                out_specs=pl.BlockSpec((tile_n, 1), lambda i: (i, 0)),
            ),
            compiler_params=_compiler_params(("parallel",), resident),
            cost_estimate=cost,
        )(x, v_col)
        return out.reshape(n)

    # ---- Rare huge-D path: tile the contraction axis, f32 accumulator scratch. ----
    tile_n = 256 if n >= 256 else n
    tile_d = max(128, (tile_budget_bytes // max(1, tile_n * itemsize)) // 128 * 128)
    tile_d = min(tile_d, _round_up(d, 128))
    d_pad = _round_up(d, tile_d)
    # Zero padding along D keeps the partial K block exact (0 * anything == 0).
    x_p = jnp.pad(x, ((0, 0), (0, d_pad - d))) if d_pad != d else x
    v_p = jnp.pad(v_col, ((0, d_pad - d), (0, 0))) if d_pad != d else v_col

    grid = (pl.cdiv(n, tile_n), d_pad // tile_d)
    resident = 2 * tile_n * tile_d * itemsize + 2 * tile_d * itemsize \
        + 2 * tile_n * out_itemsize + tile_n * 4

    out = pl.pallas_call(
        _gemv_kernel_ktiled,
        out_shape=jax.ShapeDtypeStruct((n, 1), out_dtype),
        grid_spec=pltpu.PrefetchScalarGridSpec(
            num_scalar_prefetch=0,
            grid=grid,
            in_specs=[
                pl.BlockSpec((tile_n, tile_d), lambda i, k: (i, k)),
                pl.BlockSpec((tile_d, 1), lambda i, k: (k, 0)),
            ],
            out_specs=pl.BlockSpec((tile_n, 1), lambda i, k: (i, 0)),
            scratch_shapes=[pltpu.VMEM((tile_n, 1), jnp.float32)],
        ),
        compiler_params=_compiler_params(("parallel", "arbitrary"), resident),
        cost_estimate=cost,
    )(x_p, v_p)
    return out.reshape(n)


if __name__ == "__main__":
    key = jax.random.PRNGKey(0)
    k_v, k_x, k_x2 = jax.random.split(key, 3)

    # Small shapes consistent with the module (one sample per row).
    input_dim = 32   # D (module default is 2; any D works)
    batch = 8        # N

    v = jax.random.normal(k_v, (input_dim,), dtype=jnp.float32)
    x = jax.random.normal(k_x, (batch, input_dim), dtype=jnp.float32)

    # Exact (f32) path.
    y = jax.block_until_ready(linear_dual_variable_forward(x, v))
    y_ref = v @ x.T
    assert y.shape == (batch,)
    assert jnp.allclose(y, y_ref, atol=1e-5, rtol=1e-5)

    # Recommended bandwidth-saving path (bf16 stream, f32 accumulation) — looser tol.
    y_bf16 = jax.block_until_ready(
        linear_dual_variable_forward(x, v, compute_dtype=jnp.bfloat16)
    )
    assert jnp.allclose(y_bf16, y_ref, atol=5e-2, rtol=5e-2)

    # Ragged / multi-tile N coverage (no padding of x is ever materialized).
    n2, d2 = 3000, 5
    v2 = jax.random.normal(k_v, (d2,), dtype=jnp.float32)
    x2 = jax.random.normal(k_x2, (n2, d2), dtype=jnp.float32)
    y2 = jax.block_until_ready(linear_dual_variable_forward(x2, v2))
    assert jnp.allclose(y2, v2 @ x2.T, atol=1e-4, rtol=1e-4)

    print("KERNEL_OK")
</pallas_src>

<mosaic_0001>
module attributes {stable_mosaic.version = 11 : i64} {
  func.func @_gemv_kernel(%arg0: i32, %arg1: memref<8x32xf32, #tpu.memory_space<vmem>>, %arg2: memref<32x1xf32, #tpu.memory_space<vmem>>, %arg3: memref<8x1xf32, #tpu.memory_space<vmem>>) attributes {dimension_semantics = [#tpu.dimension_semantics<parallel>], iteration_bounds = array<i64: 1>, scalar_prefetch = 0 : i64, scratch_operands = 0 : i64, tpu.core_type = #tpu.core_type<tc>, window_params = [{transform_indices = @transform_0, window_bounds = array<i64: 8, 32>}, {pipeline_mode = #tpu.pipeline_mode<synchronous>, transform_indices = @transform_1, window_bounds = array<i64: 32, 1>}, {transform_indices = @transform_2, window_bounds = array<i64: 8, 1>}]} {
    %c0 = arith.constant 0 : index
    %c0_0 = arith.constant 0 : index
    %0 = vector.load %arg1[%c0, %c0_0] : memref<8x32xf32, #tpu.memory_space<vmem>>, vector<8x32xf32>
    %c0_1 = arith.constant 0 : index
    %c0_2 = arith.constant 0 : index
    %1 = vector.load %arg2[%c0_1, %c0_2] : memref<32x1xf32, #tpu.memory_space<vmem>>, vector<32x1xf32>
    %cst = arith.constant dense<0.000000e+00> : vector<8x1xf32>
    %2 = tpu.matmul %0, %1, %cst {dimension_numbers = #tpu.dot_dimension_numbers<[1], [0], [0], [1], [0, 0, 1, 1], [], []>} : vector<8x32xf32>, vector<32x1xf32>, vector<8x1xf32> -> vector<8x1xf32>
    %c0_3 = arith.constant 0 : index
    %c0_4 = arith.constant 0 : index
    %3 = vector.load %arg3[%c0_3, %c0_4] : memref<8x1xf32, #tpu.memory_space<vmem>>, vector<8x1xf32>
    tpu.vector_store %arg3[%c0_3, %c0_4], %2 {strides = array<i32>} : memref<8x1xf32, #tpu.memory_space<vmem>>, vector<8x1xf32>,
    return
  }
  func.func @transform_0(%arg0: i32) -> (i32, i32) {
    %c0_i32 = arith.constant 0 : i32
    %c0_i32_0 = arith.constant 0 : i32
    return %arg0, %c0_i32 : i32, i32
  }
  func.func @transform_1(%arg0: i32) -> (i32, i32) {
    %c0_i32 = arith.constant 0 : i32
    %c0_i32_0 = arith.constant 0 : i32
    %c0_i32_1 = arith.constant 0 : i32
    return %c0_i32, %c0_i32_0 : i32, i32
  }
  func.func @transform_2(%arg0: i32) -> (i32, i32) {
    %c0_i32 = arith.constant 0 : i32
    %c0_i32_0 = arith.constant 0 : i32
    return %arg0, %c0_i32 : i32, i32
  }
}

</mosaic_0001>

<bundles_post_ra>
// kernel: tpu_custom_call.1
= control target key start
LH: loop header
LB: loop body
LE: loop exit
PB: predicated region body
PF: predicated region fallthrough
CT: control target
= control target key end

     0   :  { %v122_v0 = vmov 0.0|0.0   ;;  %vm123_vm0 = vmmov 0   ;;  %v124_v4 = vmov 0.0   ;;  %vm16_vm1 = vcmask 261120   ;;  %s158_s1 = inlined_call_operand.vmem [shape: f32[32,1], index: 1, kind: input, shape index: {}]   ;;  %s159_s0 = inlined_call_operand.vmem [shape: f32[8,32], index: 0, kind: input, shape index: {}]   ;;  %s160_s2 = inlined_call_operand.vmem [shape: f32[8,1], index: 2, kind: output, shape index: {}]  }
   0x1   :  { %113 = vmatprep.subr.bf16.mxu0 %v122_v0  ;;  %v12_v1 = vld [vmem:[%s158_s1] sm:$0xff]  ;;  %v13_v2 = vld [vmem:[%s158_s1 + $0x8] sm:$0xff]  ;;  %v14_v3 = vld [vmem:[%s158_s1 + $0x10] sm:$0xff]  ;;  %110 = vmatprep.mubr.msk.f32.mxu0 %vm123_vm0, %v124_v4  ;;  %vm90_vm2 = vcmask 7168  }
   0x2   :  { %v114_v5 = vpack.c.bf16 %v13_v2, %v12_v1  ;;  %v15_v6 = vld [vmem:[%s158_s1 + $0x18] sm:$0xff]  ;;  %v11_v8 = vld [vmem:[%s159_s0] sm:$0xff] }
   0x3   :  { %v117_v7 = vpack.c.bf16 %v15_v6, %v14_v3 }
   0x4   :  { %115 = vmatpush3.bf16.msra.mxu0 %v114_v5 }
   0x5   :  { %116 = vmatprep.subr.bf16.mxu0 %v122_v0 }
   0x8   :  { %118 = vmatpush3.bf16.msra.mxu0 %v117_v7 }
   0xb   :  { %111 = vmatmul.mubr.msk.f32.vlgmr.msra.gmra.mrb[0].mxu0 %vm16_vm1, %v11_v8 }
  0xde   :  { %v86_v9 = vpop.f32.mrb[0].mxu0 }
  0xdf   :  { %91 = vst.msk [vmem:[%s160_s2] sm:$0xff] %vm90_vm2, %v86_v9  ;;  %v112_v10 = vpop.f32.mrb[1].mxu0 }

</bundles_post_ra>
